<compile_context>
chip_gen: v7x
topology: tpu7x:2x2x1
jax: 0.10.0
libtpu: 0.0.40
codegen_flags: <defaults>
</compile_context>

<pallas_src>
import jax
import jax.numpy as jnp
from jax.experimental import pallas as pl
from jax.experimental.pallas import tpu as pltpu


def _permute_linear_relu_argmax_kernel(w_ref, b_ref, x_ref, out_ref):
    # w_ref  : SMEM (4,) f32 = [w00, w01, w10, w11] (row-major Linear weight)
    # b_ref  : SMEM (2,) f32 = [b0, b1]
    # x_ref  : VMEM (2, 2) f32 = (C, T) slab of the (1, C, T) input
    # out_ref: VMEM (1, 2) i32 ; out_ref[0, t] = argmax index for token t
    xc0 = x_ref[0:1, :]          # (1, T) channel 0 over lanes
    xc1 = x_ref[1:2, :]          # (1, T) channel 1 over lanes

    w00 = w_ref[0]
    w01 = w_ref[1]
    w10 = w_ref[2]
    w11 = w_ref[3]
    b0 = b_ref[0]
    b1 = b_ref[1]

    # F.linear(permute(x), W, b): logit for output feature o at token t is
    #   sum_c x[c, t] * W[o, c] + b[o]   -- pure f32 VPU multiply-adds.
    s0 = xc0 * w00 + xc1 * w01 + b0      # (1, T)
    s1 = xc0 * w10 + xc1 * w11 + b1      # (1, T)

    # ReLU, then width-2 argmax: strict '>' on post-ReLU values keeps the
    # first-occurrence tie-break of torch.max (index 0 on ties).
    x2_0 = jnp.maximum(s0, 0.0)
    x2_1 = jnp.maximum(s1, 0.0)
    out_ref[...] = (x2_1 > x2_0).astype(jnp.int32)   # (1, T)


@jax.jit
def model_forward(x1, weight, bias):
    # x1: (1, 2, 2) f32 ; weight: (2, 2) f32 ; bias: (2,) f32
    x2d = x1.reshape(2, 2)                       # (C, T) — fuses under jit

    out_row = pl.pallas_call(
        _permute_linear_relu_argmax_kernel,
        out_shape=jax.ShapeDtypeStruct((1, 2), jnp.int32),
        in_specs=[
            pl.BlockSpec(memory_space=pltpu.SMEM),   # weight scalars
            pl.BlockSpec(memory_space=pltpu.SMEM),   # bias scalars
            pl.BlockSpec(memory_space=pltpu.VMEM),   # x slab
        ],
        out_specs=pl.BlockSpec(memory_space=pltpu.VMEM),
        cost_estimate=pl.CostEstimate(
            flops=12, transcendentals=0, bytes_accessed=48),
    )(weight.reshape(-1).astype(jnp.float32),
      bias.reshape(-1).astype(jnp.float32),
      x2d)

    # (1, T) lane-major indices -> (1, T, 1), then "expand" last dim to 2.
    idx = out_row.reshape(1, 2, 1)
    return jnp.broadcast_to(idx, (1, 2, 2))


if __name__ == "__main__":
    key = jax.random.PRNGKey(0)
    kx, kw, kb = jax.random.split(key, 3)

    # deterministic "parameters" for Linear(2, 2)
    weight = jax.random.normal(kw, (2, 2), dtype=jnp.float32) * 0.5
    bias = jax.random.normal(kb, (2,), dtype=jnp.float32) * 0.1

    # input matching the module: (1, 2, 2)
    x1 = jax.random.normal(kx, (1, 2, 2), dtype=jnp.float32)

    out = model_forward(x1, weight, bias)
    jax.block_until_ready(out)

    # sanity check against plain-JAX reference
    v1 = jnp.transpose(x1, (0, 2, 1))
    v2 = v1 @ weight.T + bias
    x2 = jnp.maximum(v2, 0.0)
    ref = jnp.argmax(x2, axis=-1, keepdims=True).astype(jnp.int32)
    ref = jnp.broadcast_to(ref, (1, 2, 2))
    assert jnp.array_equal(out, ref), (out, ref)

    print("KERNEL_OK")
</pallas_src>

<mosaic_0001>
module attributes {stable_mosaic.version = 11 : i64} {
  func.func @_permute_linear_relu_argmax_kernel(%arg0: memref<4xf32, #tpu.memory_space<smem>>, %arg1: memref<2xf32, #tpu.memory_space<smem>>, %arg2: memref<2x2xf32, #tpu.memory_space<vmem>>, %arg3: memref<1x2xi32, #tpu.memory_space<vmem>>) attributes {dimension_semantics = [], scalar_prefetch = 0 : i64, scratch_operands = 0 : i64, tpu.core_type = #tpu.core_type<tc>} {
    %c0 = arith.constant 0 : index
    %c0_0 = arith.constant 0 : index
    %0 = vector.load %arg2[%c0, %c0_0] : memref<2x2xf32, #tpu.memory_space<vmem>>, vector<1x2xf32>
    %c1 = arith.constant 1 : index
    %c0_1 = arith.constant 0 : index
    %1 = vector.load %arg2[%c1, %c0_1] : memref<2x2xf32, #tpu.memory_space<vmem>>, vector<1x2xf32>
    %c0_2 = arith.constant 0 : index
    %2 = memref.load %arg0[%c0_2] : memref<4xf32, #tpu.memory_space<smem>>
    %c1_3 = arith.constant 1 : index
    %3 = memref.load %arg0[%c1_3] : memref<4xf32, #tpu.memory_space<smem>>
    %c2 = arith.constant 2 : index
    %4 = memref.load %arg0[%c2] : memref<4xf32, #tpu.memory_space<smem>>
    %c3 = arith.constant 3 : index
    %5 = memref.load %arg0[%c3] : memref<4xf32, #tpu.memory_space<smem>>
    %c0_4 = arith.constant 0 : index
    %6 = memref.load %arg1[%c0_4] : memref<2xf32, #tpu.memory_space<smem>>
    %c1_5 = arith.constant 1 : index
    %7 = memref.load %arg1[%c1_5] : memref<2xf32, #tpu.memory_space<smem>>
    %8 = vector.broadcast %2 : f32 to vector<1x2xf32>
    %9 = arith.mulf %0, %8 : vector<1x2xf32>
    %10 = vector.broadcast %3 : f32 to vector<1x2xf32>
    %11 = arith.mulf %1, %10 : vector<1x2xf32>
    %12 = arith.addf %9, %11 : vector<1x2xf32>
    %13 = vector.broadcast %6 : f32 to vector<1x2xf32>
    %14 = arith.addf %12, %13 : vector<1x2xf32>
    %15 = vector.broadcast %4 : f32 to vector<1x2xf32>
    %16 = arith.mulf %0, %15 : vector<1x2xf32>
    %17 = vector.broadcast %5 : f32 to vector<1x2xf32>
    %18 = arith.mulf %1, %17 : vector<1x2xf32>
    %19 = arith.addf %16, %18 : vector<1x2xf32>
    %20 = vector.broadcast %7 : f32 to vector<1x2xf32>
    %21 = arith.addf %19, %20 : vector<1x2xf32>
    %cst = arith.constant 0.000000e+00 : f32
    %22 = vector.broadcast %cst : f32 to vector<1x2xf32>
    %23 = arith.maximumf %14, %22 : vector<1x2xf32>
    %cst_6 = arith.constant 0.000000e+00 : f32
    %24 = vector.broadcast %cst_6 : f32 to vector<1x2xf32>
    %25 = arith.maximumf %21, %24 : vector<1x2xf32>
    %26 = arith.cmpf ogt, %25, %23 : vector<1x2xf32>
    %27 = arith.extui %26 : vector<1x2xi1> to vector<1x2xi32>
    %c0_7 = arith.constant 0 : index
    %c0_8 = arith.constant 0 : index
    %28 = vector.load %arg3[%c0_7, %c0_8] : memref<1x2xi32, #tpu.memory_space<vmem>>, vector<1x2xi32>
    tpu.vector_store %arg3[%c0_7, %c0_8], %27 {strides = array<i32>} : memref<1x2xi32, #tpu.memory_space<vmem>>, vector<1x2xi32>,
    return
  }
}

</mosaic_0001>

<bundles_post_ra>
// kernel: model_forward.1
= control target key start
LH: loop header
LB: loop body
LE: loop exit
PB: predicated region body
PF: predicated region fallthrough
CT: control target
= control target key end

     0   :  { %8 = vsyncpa [#allocation3], 0  ;;  %s146_s0 = inlined_call_operand.vmem [shape: f32[4], index: 0, kind: input, shape index: {}]   ;;  %s147_s1 = inlined_call_operand.vmem [shape: f32[2], index: 1, kind: input, shape index: {}]   ;;  %s148_s2 = inlined_call_operand.vmem [shape: f32[2,2], index: 2, kind: input, shape index: {}]   ;;  %s149_s3 = inlined_call_operand.vmem [shape: s32[1,2], index: 3, kind: output, shape index: {}]  }
   0x1   :  { %s16_s14 = sshll.u32 %s146_s0, 4  ;;  %s17_s14 = int_to_ptr.vmem [resolvable:$true] %s16_s14 }
   0x2   :  { %9 = vsyncpa [#allocation5], 0  ;;  %s26_s17 = sshll.u32 %s147_s1, 4  ;;  %s80_s18 = scalar_lea.vmem %s17_s14, 16  ;;  %s27_s17 = int_to_ptr.vmem [resolvable:$true] %s26_s17 }
   0x3   :  { %p81_p0 = scmp.ne.s32.totalorder %s17_s14, %s80_s18  ;;  %p85_p1 = scmp.lt.s32.totalorder %s17_s14, %s17_s14 }
   0x4   :  { %p86_p2 = scmp.lt.s32.totalorder %s80_s18, %s80_s18 }
   0x6   :  { %p87_p3 = por %p86_p2, %p85_p1 }
   0x8   :  { %p88_p4 = pnand %p87_p3, %p81_p0 }
   0xa   :  { %91 = shalt.err (!%p88_p4)
}
   0xb   :  { %s108_s19 = smov [#allocation2]   ;;  %s92_s20 = scalar_lea.vmem %s27_s17, 16 }
   0xc   :  { %19 = dma.vmem_to_smem %s17_s14, 16, %s108_s19, [#allocation3]  }
   0xd   :  { %p93_p5 = scmp.ne.s32.totalorder %s27_s17, %s92_s20  ;;  %p97_p6 = scmp.lt.s32.totalorder %s27_s17, %s27_s17 }
   0xe   :  { %p98_p7 = scmp.lt.s32.totalorder %s92_s20, %s92_s20 }
  0x10   :  { %p99_p8 = por %p98_p7, %p97_p6 }
  0x12   :  { %p100_p9 = pnand %p99_p8, %p93_p5 }
  0x14   :  { %103 = shalt.err (!%p100_p9)
}
  0x15   :  { %s109_s0 = smov [#allocation4]  }
  0x16   :  { %29 = dma.vmem_to_smem %s27_s17, 16, %s109_s0, [#allocation5]  }
  0x17   :  { %104 = dma.done.wait [#allocation3], 16  }
  0x18   :  { %105 = vsyncadd [#allocation3], 4294967280 }
  0x19   :  { %106 = dma.done.wait [#allocation5], 16  }
  0x1a   :  { %107 = vsyncadd [#allocation5], 4294967280 }
  0x1b   :  { %38 = sfence }
  0x1c   :  { %s41_s1 = sld [smem:[#allocation2]]  ;;  %s73_s21 = sld [smem:[#allocation2 + $0x1]]  ;;  %v39_v0 = vld [vmem:[%s148_s2] sm:$0x1]  ;;  %v40_v1 = vld [vmem:[%s148_s2 + $0x1] sm:$0x1] }
  0x1d   :  { %s74_s22 = sld [smem:[#allocation2 + $0x2]]  ;;  %s75_s23 = sld [smem:[#allocation2 + $0x3]]  ;;  %vm65_vm0 = vcmask 8192   ;;  %v110_v18 = vmov 0  }
  0x1e   :  { %s45_s24 = sld [smem:[#allocation4]]  ;;  %s76_s25 = sld [smem:[#allocation4 + $0x1]] }
  0x22   :  { %v47_v2 = vstv %s41_s1  ;;  %v49_v4 = vstv %s73_s21 }
  0x23   :  { %v48_v3 = vmul.f32 %v47_v2, %v39_v0  ;;  %v54_v5 = vstv %s74_s22  ;;  %v50_v6 = vmul.f32 %v49_v4, %v40_v1  ;;  %v56_v8 = vstv %s75_s23 }
  0x24   :  { %v55_v7 = vmul.f32 %v54_v5, %v39_v0  ;;  %v52_v9 = vstv %s45_s24  ;;  %v57_v10 = vmul.f32 %v56_v8, %v40_v1  ;;  %v59_v12 = vstv %s76_s25 }
  0x25   :  { %v51_v11 = vadd.f32 %v50_v6, %v48_v3 }
  0x26   :  { %v58_v13 = vadd.f32 %v57_v10, %v55_v7 }
  0x27   :  { %v53_v14 = vadd.f32 %v52_v9, %v51_v11 }
  0x28   :  { %v60_v15 = vadd.f32 %v59_v12, %v58_v13 }
  0x29   :  { %v61_v16 = vmax.f32 %v53_v14, 0.0 }
  0x2a   :  { %v62_v17 = vmax.f32 %v60_v15, 0.0 }
  0x2c   :  { %vm63_vm1 = vcmp.gt.f32.partialorder %v62_v17, %v61_v16 }
  0x2d   :  { %v64_v19 = vsel %vm63_vm1, 1, %v110_v18 }
  0x2e   :  { %66 = vst.msk [vmem:[%s149_s3] sm:$0x1] %vm65_vm0, %v64_v19 }
  0x2f   :  { %71 = vsyncpa [#allocation3], 1 }
  0x30   :  { %72 = vsyncpa [#allocation5], 1 }

</bundles_post_ra>
